<compile_context>
chip_gen: v7x
topology: tpu7x:2x2x1
jax: 0.10.0
libtpu: 0.0.40
codegen_flags: <defaults>
</compile_context>

<pallas_src>
import functools

import jax
import jax.numpy as jnp
from jax import lax
from jax.experimental import pallas as pl
from jax.experimental.pallas import tpu as pltpu

_LANE = 128
_TARGET_BLOCK_BYTES = 2 << 20   # ~2 MiB per input block (~85-90% HBM roofline)


def _lp_terms(d, y, p):
    """Elementwise |d|^p and |y|^p, avoiding transcendentals for common p."""
    if p == 2:
        return d * d, y * y
    if p == 1:
        return jnp.abs(d), jnp.abs(y)
    if isinstance(p, int) and p > 0:
        return lax.integer_pow(jnp.abs(d), p), lax.integer_pow(jnp.abs(y), p)
    # Non-integer p: per-element pow -> EUP-bound (cost estimate accounts for it).
    return jnp.abs(d) ** p, jnp.abs(y) ** p


def _norm_lp_kernel(x_ref, y_ref, o_ref, err_acc, yn_acc, *, p, rem_sub,
                    mask_last):
    """Grid: (row-group g [parallel], reduction chunk k [arbitrary]).

    x_ref / y_ref : (R, s_blk, 128) input blocks (native dtype)
    o_ref         : (R, 128) f32, per-row ratio broadcast over lanes
    err_acc/yn_acc: (R, 128) f32 lane-dense per-row accumulators
    """
    k = pl.program_id(1)
    nk = pl.num_programs(1)

    @pl.when(k == 0)
    def _():
        err_acc[...] = jnp.zeros_like(err_acc)
        yn_acc[...] = jnp.zeros_like(yn_acc)

    def accumulate(masked):
        x = x_ref[...].astype(jnp.float32)
        y = y_ref[...].astype(jnp.float32)
        if masked:
            # Partial last reduction chunk: zero out-of-range sublanes.  The
            # OOB region of the VMEM block is stale (NOT guaranteed zero), so
            # use a select (safe even if the stale bits decode to inf/nan).
            sub = lax.broadcasted_iota(jnp.int32, x.shape, dimension=1)
            valid = sub < rem_sub
            x = jnp.where(valid, x, 0.0)
            y = jnp.where(valid, y, 0.0)
        d = x - y
        err_t, yn_t = _lp_terms(d, y, p)
        # Sublane-direction fold per row (VALU); the expensive cross-lane
        # reduce is deferred to the finalize step.
        err_acc[...] += jnp.sum(err_t, axis=1)
        yn_acc[...] += jnp.sum(yn_t, axis=1)

    if mask_last:
        @pl.when(k < nk - 1)
        def _():
            accumulate(False)

        @pl.when(k == nk - 1)
        def _():
            accumulate(True)
    else:
        accumulate(False)

    @pl.when(k == nk - 1)
    def _():
        err_s = jnp.sum(err_acc[...], axis=1, keepdims=True)   # (R, 1)
        yn_s = jnp.sum(yn_acc[...], axis=1, keepdims=True)     # (R, 1)
        if p == 2:
            ratio = jnp.sqrt(err_s) / jnp.sqrt(yn_s)
        elif p == 1:
            ratio = err_s / yn_s
        else:
            inv_p = 1.0 / float(p)
            ratio = (err_s ** inv_p) / (yn_s ** inv_p)
        # NOTE: an all-zero y row yields inf/nan, matching the PyTorch reference.
        o_ref[...] = jnp.broadcast_to(ratio, o_ref.shape)


def norm_lp_loss(x, y, p=2):
    """Pallas implementation of NormLpLoss.forward(x, y). Returns f32 scalar."""
    b = x.shape[0]
    xf = x.reshape(b, -1)
    yf = y.reshape(b, -1)
    n = xf.shape[1]
    itemsize = int(jnp.dtype(xf.dtype).itemsize)

    # Lane-pack each row into (n128, 128) full vregs; zero-copy when n%128==0.
    n128 = int(pl.cdiv(n, _LANE))
    if n128 * _LANE != n:
        # TODO(synk): replace this pad with an in-kernel lane-masked (b, n)
        # path to avoid the extra HBM round trip for rows not divisible by 128.
        xf = jnp.pad(xf, ((0, 0), (0, n128 * _LANE - n)))
        yf = jnp.pad(yf, ((0, 0), (0, n128 * _LANE - n)))
    xp = xf.reshape(b, n128, _LANE)
    yp = yf.reshape(b, n128, _LANE)

    # Dtype-aware block sizing: ~2 MiB of input per block regardless of dtype.
    target_sub = int(max(8, _TARGET_BLOCK_BYTES // (_LANE * itemsize)))
    if n128 > target_sub:
        # Large rows: one row per group, stream kt chunks; mask the last one
        # in-kernel instead of padding in HBM.
        r_blk = 1
        s_blk = target_sub                      # multiple of 8
        kt = int(pl.cdiv(n128, s_blk))
    else:
        # Small rows: pack several rows per grid step so each DMA still moves
        # ~2 MiB (amortises the ~0.35 us per-step overhead).
        r_blk = int(max(1, min(b, target_sub // n128)))
        s_blk = n128                            # full row -> no (8,128) issue
        kt = 1
    ngroups = int(pl.cdiv(b, r_blk))
    rem_sub = int(n128 - (kt - 1) * s_blk)      # valid sublanes in last chunk
    mask_last = bool(rem_sub != s_blk)

    elems = b * n128 * _LANE
    trans = 2 * b if (p in (1, 2) or isinstance(p, int)) else 2 * elems

    kernel = functools.partial(_norm_lp_kernel, p=p, rem_sub=rem_sub,
                               mask_last=mask_last)
    out = pl.pallas_call(
        kernel,
        out_shape=jax.ShapeDtypeStruct((ngroups, r_blk, _LANE), jnp.float32),
        grid_spec=pltpu.PrefetchScalarGridSpec(
            num_scalar_prefetch=0,
            grid=(ngroups, kt),
            in_specs=[
                pl.BlockSpec((r_blk, s_blk, _LANE), lambda g, k: (g, k, 0)),
                pl.BlockSpec((r_blk, s_blk, _LANE), lambda g, k: (g, k, 0)),
            ],
            out_specs=pl.BlockSpec((None, r_blk, _LANE), lambda g, k: (g, 0, 0)),
            scratch_shapes=[
                pltpu.VMEM((r_blk, _LANE), jnp.float32),  # sum |x-y|^p per row
                pltpu.VMEM((r_blk, _LANE), jnp.float32),  # sum |y|^p   per row
            ],
        ),
        compiler_params=pltpu.CompilerParams(
            # TODO(synk): on v7x with b==1, split kt across both TensorCores
            # (leading 'parallel' axis of size 2 + wrapper-side combine).
            dimension_semantics=("parallel", "arbitrary"),
            vmem_limit_bytes=32 << 20,
        ),
        cost_estimate=pl.CostEstimate(
            flops=7 * elems,
            transcendentals=trans,
            bytes_accessed=2 * elems * itemsize + ngroups * r_blk * _LANE * 4,
        ),
    )(xp, yp)

    # Row g*r_blk + r's ratio is replicated across the 128 lanes of out[g, r];
    # rows beyond b (partial last group) are garbage and are sliced away.
    ratios = out[:, :, 0].reshape(-1)[:b]
    return jnp.sum(ratios)


def _reference(x, y, p=2):
    b = x.shape[0]
    xf = x.reshape(b, -1).astype(jnp.float32)
    yf = y.reshape(b, -1).astype(jnp.float32)
    err = jnp.sum(jnp.abs(xf - yf) ** p, axis=1) ** (1.0 / p)
    yn = jnp.sum(jnp.abs(yf) ** p, axis=1) ** (1.0 / p)
    return jnp.sum(err / yn)


if __name__ == "__main__":
    key = jax.random.PRNGKey(0)
    kx, ky = jax.random.split(key)

    # Small NCHW shape implied by the module: batch=2, channels=4, 16x16.
    B, C, H, W = 2, 4, 16, 16
    x = jax.random.normal(kx, (B, C, H, W), dtype=jnp.float32)
    y = jax.random.normal(ky, (B, C, H, W), dtype=jnp.float32) + 0.5

    loss = jax.block_until_ready(norm_lp_loss(x, y, p=2))
    ref = jax.block_until_ready(_reference(x, y, p=2))
    assert jnp.allclose(loss, ref, rtol=1e-4, atol=1e-5), (loss, ref)

    # Also exercise the large-row path: multi-chunk reduction with an
    # in-kernel-masked partial last chunk and no wrapper pad (n128 = 4101).
    kx2, ky2 = jax.random.split(ky)
    x2 = jax.random.normal(kx2, (1, 4101, 128), dtype=jnp.float32)
    y2 = jax.random.normal(ky2, (1, 4101, 128), dtype=jnp.float32) + 0.5
    loss2 = jax.block_until_ready(norm_lp_loss(x2, y2, p=2))
    ref2 = jax.block_until_ready(_reference(x2, y2, p=2))
    assert jnp.allclose(loss2, ref2, rtol=1e-4, atol=1e-5), (loss2, ref2)

    print("KERNEL_OK")
</pallas_src>

<mosaic_0001>
module attributes {stable_mosaic.version = 11 : i64} {
  func.func @_norm_lp_kernel(%arg0: i32, %arg1: i32, %arg2: memref<2x8x128xf32, #tpu.memory_space<vmem>>, %arg3: memref<2x8x128xf32, #tpu.memory_space<vmem>>, %arg4: memref<1x2x128xf32, #tpu.memory_space<vmem>>, %arg5: memref<2x128xf32, #tpu.memory_space<vmem>>, %arg6: memref<2x128xf32, #tpu.memory_space<vmem>>) attributes {dimension_semantics = [#tpu.dimension_semantics<parallel>, #tpu.dimension_semantics<arbitrary>], iteration_bounds = array<i64: 1, 1>, scalar_prefetch = 0 : i64, scratch_operands = 2 : i64, tpu.core_type = #tpu.core_type<tc>, window_params = [{transform_indices = @transform_0, window_bounds = array<i64: 2, 8, 128>}, {transform_indices = @transform_1, window_bounds = array<i64: 2, 8, 128>}, {transform_indices = @transform_2, window_bounds = array<i64: 1, 2, 128>}]} {
    %c0_i32 = arith.constant 0 : i32
    %0 = arith.cmpi eq, %arg1, %c0_i32 : i32
    %1 = arith.extui %0 : i1 to i32
    %c0_i32_0 = arith.constant 0 : i32
    %2 = arith.cmpi ne, %1, %c0_i32_0 : i32
    scf.if %2 {
      %cst_17 = arith.constant 0.000000e+00 : f32
      %19 = vector.broadcast %cst_17 : f32 to vector<2x128xf32>
      %c0_18 = arith.constant 0 : index
      %c0_19 = arith.constant 0 : index
      %20 = vector.load %arg5[%c0_18, %c0_19] : memref<2x128xf32, #tpu.memory_space<vmem>>, vector<2x128xf32>
      tpu.vector_store %arg5[%c0_18, %c0_19], %19 {strides = array<i32>} : memref<2x128xf32, #tpu.memory_space<vmem>>, vector<2x128xf32>,
      %cst_20 = arith.constant 0.000000e+00 : f32
      %21 = vector.broadcast %cst_20 : f32 to vector<2x128xf32>
      %c0_21 = arith.constant 0 : index
      %c0_22 = arith.constant 0 : index
      %22 = vector.load %arg6[%c0_21, %c0_22] : memref<2x128xf32, #tpu.memory_space<vmem>>, vector<2x128xf32>
      tpu.vector_store %arg6[%c0_21, %c0_22], %21 {strides = array<i32>} : memref<2x128xf32, #tpu.memory_space<vmem>>, vector<2x128xf32>,
    } else {
    }
    %c0 = arith.constant 0 : index
    %c0_1 = arith.constant 0 : index
    %c0_2 = arith.constant 0 : index
    %3 = vector.load %arg2[%c0, %c0_1, %c0_2] : memref<2x8x128xf32, #tpu.memory_space<vmem>>, vector<2x8x128xf32>
    %c0_3 = arith.constant 0 : index
    %c0_4 = arith.constant 0 : index
    %c0_5 = arith.constant 0 : index
    %4 = vector.load %arg3[%c0_3, %c0_4, %c0_5] : memref<2x8x128xf32, #tpu.memory_space<vmem>>, vector<2x8x128xf32>
    %5 = arith.subf %3, %4 : vector<2x8x128xf32>
    %6 = arith.mulf %5, %5 : vector<2x8x128xf32>
    %7 = arith.mulf %4, %4 : vector<2x8x128xf32>
    %c0_6 = arith.constant 0 : index
    %c0_7 = arith.constant 0 : index
    %8 = vector.load %arg5[%c0_6, %c0_7] : memref<2x128xf32, #tpu.memory_space<vmem>>, vector<2x128xf32>
    %cst = arith.constant dense<0.000000e+00> : vector<2x128xf32>
    %9 = vector.multi_reduction <add>, %6, %cst [1] : vector<2x8x128xf32> to vector<2x128xf32>
    %10 = arith.addf %8, %9 : vector<2x128xf32>
    %c0_8 = arith.constant 0 : index
    %c0_9 = arith.constant 0 : index
    %11 = vector.load %arg5[%c0_8, %c0_9] : memref<2x128xf32, #tpu.memory_space<vmem>>, vector<2x128xf32>
    tpu.vector_store %arg5[%c0_8, %c0_9], %10 {strides = array<i32>} : memref<2x128xf32, #tpu.memory_space<vmem>>, vector<2x128xf32>,
    %c0_10 = arith.constant 0 : index
    %c0_11 = arith.constant 0 : index
    %12 = vector.load %arg6[%c0_10, %c0_11] : memref<2x128xf32, #tpu.memory_space<vmem>>, vector<2x128xf32>
    %cst_12 = arith.constant dense<0.000000e+00> : vector<2x128xf32>
    %13 = vector.multi_reduction <add>, %7, %cst_12 [1] : vector<2x8x128xf32> to vector<2x128xf32>
    %14 = arith.addf %12, %13 : vector<2x128xf32>
    %c0_13 = arith.constant 0 : index
    %c0_14 = arith.constant 0 : index
    %15 = vector.load %arg6[%c0_13, %c0_14] : memref<2x128xf32, #tpu.memory_space<vmem>>, vector<2x128xf32>
    tpu.vector_store %arg6[%c0_13, %c0_14], %14 {strides = array<i32>} : memref<2x128xf32, #tpu.memory_space<vmem>>, vector<2x128xf32>,
    %c0_i32_15 = arith.constant 0 : i32
    %16 = arith.cmpi eq, %arg1, %c0_i32_15 : i32
    %17 = arith.extui %16 : i1 to i32
    %c0_i32_16 = arith.constant 0 : i32
    %18 = arith.cmpi ne, %17, %c0_i32_16 : i32
    scf.if %18 {
      %c0_17 = arith.constant 0 : index
      %c0_18 = arith.constant 0 : index
      %19 = vector.load %arg5[%c0_17, %c0_18] : memref<2x128xf32, #tpu.memory_space<vmem>>, vector<2x128xf32>
      %cst_19 = arith.constant dense<0.000000e+00> : vector<2xf32>
      %20 = vector.multi_reduction <add>, %19, %cst_19 [1] : vector<2x128xf32> to vector<2xf32>
      %21 = vector.shape_cast %20 : vector<2xf32> to vector<2x1xf32>
      %c0_20 = arith.constant 0 : index
      %c0_21 = arith.constant 0 : index
      %22 = vector.load %arg6[%c0_20, %c0_21] : memref<2x128xf32, #tpu.memory_space<vmem>>, vector<2x128xf32>
      %cst_22 = arith.constant dense<0.000000e+00> : vector<2xf32>
      %23 = vector.multi_reduction <add>, %22, %cst_22 [1] : vector<2x128xf32> to vector<2xf32>
      %24 = vector.shape_cast %23 : vector<2xf32> to vector<2x1xf32>
      %25 = math.sqrt %21 : vector<2x1xf32>
      %26 = math.sqrt %24 : vector<2x1xf32>
      %27 = arith.divf %25, %26 : vector<2x1xf32>
      %28 = vector.shape_cast %27 : vector<2x1xf32> to vector<2x1xf32>
      %29 = vector.broadcast %28 : vector<2x1xf32> to vector<2x128xf32>
      %c0_23 = arith.constant 0 : index
      %c0_24 = arith.constant 0 : index
      %c0_25 = arith.constant 0 : index
      %30 = vector.load %arg4[%c0_23, %c0_24, %c0_25] : memref<1x2x128xf32, #tpu.memory_space<vmem>>, vector<1x2x128xf32>
      %31 = vector.shape_cast %30 : vector<1x2x128xf32> to vector<2x128xf32>
      %32 = vector.shape_cast %29 : vector<2x128xf32> to vector<1x2x128xf32>
      tpu.vector_store %arg4[%c0_23, %c0_24, %c0_25], %32 {strides = array<i32>} : memref<1x2x128xf32, #tpu.memory_space<vmem>>, vector<1x2x128xf32>,
    } else {
    }
    return
  }
  func.func @transform_0(%arg0: i32, %arg1: i32) -> (i32, i32, i32) {
    %c0_i32 = arith.constant 0 : i32
    %c0_i32_0 = arith.constant 0 : i32
    return %arg0, %arg1, %c0_i32 : i32, i32, i32
  }
  func.func @transform_1(%arg0: i32, %arg1: i32) -> (i32, i32, i32) {
    %c0_i32 = arith.constant 0 : i32
    %c0_i32_0 = arith.constant 0 : i32
    return %arg0, %arg1, %c0_i32 : i32, i32, i32
  }
  func.func @transform_2(%arg0: i32, %arg1: i32) -> (i32, i32, i32) {
    %c0_i32 = arith.constant 0 : i32
    %c0_i32_0 = arith.constant 0 : i32
    %c0_i32_1 = arith.constant 0 : i32
    return %arg0, %c0_i32, %c0_i32_0 : i32, i32, i32
  }
}

</mosaic_0001>

<bundles_post_ra>
// kernel: tpu_custom_call.1
= control target key start
LH: loop header
LB: loop body
LE: loop exit
PB: predicated region body
PF: predicated region fallthrough
CT: control target
= control target key end

     0   :  { %7 = vsyncpa [#allocation5], 0  ;;  %s281_s0 = inlined_call_operand.hbm [shape: f32[2,8,128], index: 0, kind: input, shape index: {}]   ;;  %s282_s1 = inlined_call_operand.hbm [shape: f32[2,8,128], index: 1, kind: input, shape index: {}]   ;;  %s283_s2 = inlined_call_operand.hbm [shape: f32[1,2,128], index: 2, kind: output, shape index: {}]  }
   0x1   :  { %8 = vsyncpa [#allocation8], 0 }
   0x2   :  { %9 = vsyncpa [#allocation6], 0  ;;  %s224_s9 = smov [#allocation4]   ;;  %s152_s13 = scalar_lea.hbm %s281_s0, 256 }
   0x3   :  { %s15_s10 = sshll.u32 %s224_s9, 4  ;;  %p153_p0 = scmp.ne.s32.totalorder %s281_s0, %s152_s13  ;;  %s16_s10 = int_to_ptr.vmem [resolvable:$true] %s15_s10 }
   0x4   :  { %p156_p1 = scmp.lt.u32.totalorder %s152_s13, %s281_s0 }
   0x6   :  { %p158_p2 = pnand %p156_p1, %p153_p0 }
   0x8   :  { %161 = shalt.err (!%p158_p2)
}
   0x9   :  { %s162_s18 = scalar_lea.vmem %s16_s10, 256  ;;  %p167_p4 = scmp.lt.s32.totalorder %s16_s10, %s16_s10 }
   0xa   :  { %p163_p3 = scmp.ne.s32.totalorder %s16_s10, %s162_s18  ;;  %p168_p5 = scmp.lt.s32.totalorder %s162_s18, %s162_s18 }
   0xc   :  { %p169_p6 = por %p168_p5, %p167_p4 }
   0xe   :  { %p170_p7 = pnand %p169_p6, %p163_p3 }
  0x10   :  { %173 = shalt.err (!%p170_p7)
}
  0x11   :  { %s225_s19 = smov 128   ;;  %s226_s20 = smov 8  }
  0x12   :  { %21 = dma.hbm_to_vmem [thread:$0]  %s281_s0, 256, %s16_s10, [#allocation5], %s225_s19, %s225_s19, %s226_s20  }
  0x13   :  { %s227_s23 = smov [#allocation7]   ;;  %s174_s27 = scalar_lea.hbm %s282_s1, 256 }
  0x14   :  { %s27_s24 = sshll.u32 %s227_s23, 4  ;;  %p175_p8 = scmp.ne.s32.totalorder %s282_s1, %s174_s27  ;;  %s28_s24 = int_to_ptr.vmem [resolvable:$true] %s27_s24 }
  0x15   :  { %p178_p9 = scmp.lt.u32.totalorder %s174_s27, %s282_s1 }
  0x17   :  { %p180_p10 = pnand %p178_p9, %p175_p8 }
  0x19   :  { %183 = shalt.err (!%p180_p10)
}
  0x1a   :  { %s184_s4 = scalar_lea.vmem %s28_s24, 256  ;;  %p189_p12 = scmp.lt.s32.totalorder %s28_s24, %s28_s24 }
  0x1b   :  { %p185_p11 = scmp.ne.s32.totalorder %s28_s24, %s184_s4  ;;  %p190_p13 = scmp.lt.s32.totalorder %s184_s4, %s184_s4 }
  0x1d   :  { %p191_p0 = por %p190_p13, %p189_p12 }
  0x1f   :  { %p192_p1 = pnand %p191_p0, %p185_p11 }
  0x21   :  { %195 = shalt.err (!%p192_p1)
}
  0x22   :  { %33 = dma.hbm_to_vmem [thread:$0]  %s282_s1, 256, %s28_s24, [#allocation8], %s225_s19, %s225_s19, %s226_s20  }
  0x23   :  { %218 = dma.done.wait [#allocation5], 256  }
  0x24   :  { %219 = vsyncadd [#allocation5], 4294967040 }
  0x25   :  { %220 = dma.done.wait [#allocation8], 256  }
  0x26   :  { %221 = vsyncadd [#allocation8], 4294967040  ;;  %v228_v0 = vmov 0.0   ;;  %v48_v1 = vld [vmem:[#allocation7] sm:$0xff]  ;;  %v49_v2 = vld [vmem:[#allocation7 + $0x8] sm:$0xff]  ;;  %vm71_vm0 = vcmask 1041409  }
  0x27   :  { %45 = vst [vmem:[#allocation3] sm:$0x3] %v228_v0  ;;  %44 = vst [vmem:[#allocation2] sm:$0x3] %v228_v0  ;;  %v46_v3 = vld [vmem:[#allocation4] sm:$0xff]  ;;  %v54_v4 = vmul.f32 %v48_v1, %v48_v1  ;;  %v55_v5 = vmul.f32 %v49_v2, %v49_v2  ;;  %v47_v6 = vld [vmem:[#allocation4 + $0x8] sm:$0xff] }
  0x28   :  { %v50_v7 = vsub.f32 %v46_v3, %v48_v1  ;;  %v51_v8 = vsub.f32 %v47_v6, %v49_v2  ;;  %vm99_vm1 = vcmask 1041408   ;;  %s229_s1 = smov [#allocation9]  }
  0x29   :  { %v77_v9 = vrot.slane %v54_v4, 4  ;;  %v83_v10 = vrot.slane %v55_v5, 4  ;;  %s130_s6 = sshll.u32 %s229_s1, 4  ;;  %s131_s6 = int_to_ptr.vmem [resolvable:$true] %s130_s6 }
  0x2a   :  { %v52_v11 = vmul.f32 %v50_v7, %v50_v7  ;;  %v53_v12 = vmul.f32 %v51_v8, %v51_v8  ;;  %s196_s7 = scalar_lea.vmem %s131_s6, 32  ;;  %p201_p3 = scmp.lt.s32.totalorder %s131_s6, %s131_s6 }
  0x2b   :  { %v78_v13 = vadd.f32 %v77_v9, %v54_v4  ;;  %v84_v14 = vadd.f32 %v83_v10, %v55_v5  ;;  %p197_p2 = scmp.ne.s32.totalorder %s131_s6, %s196_s7  ;;  %p202_p4 = scmp.lt.s32.totalorder %s196_s7, %s196_s7 }
  0x2c   :  { %v57_v15 = vrot.slane %v52_v11, 4  ;;  %v63_v16 = vrot.slane %v53_v12, 4 }
  0x2d   :  { %v79_v17 = vrot.slane %v78_v13, 2  ;;  %v85_v18 = vrot.slane %v84_v14, 2  ;;  %p203_p5 = por %p202_p4, %p201_p3 }
  0x2e   :  { %v58_v19 = vadd.f32 %v57_v15, %v52_v11  ;;  %v64_v20 = vadd.f32 %v63_v16, %v53_v12  ;;  %v76_v29 = vld [vmem:[#allocation3] sm:$0x3]  ;;  %v56_v37 = vld [vmem:[#allocation2] sm:$0x3] }
  0x2f   :  { %v80_v21 = vadd.f32 %v79_v17, %v78_v13  ;;  %v86_v22 = vadd.f32 %v85_v18, %v84_v14  ;;  %p204_p6 = pnand %p203_p5, %p197_p2 }
  0x30   :  { %v59_v23 = vrot.slane %v58_v19, 2  ;;  %v65_v24 = vrot.slane %v64_v20, 2 }
  0x31   :  { %v81_v25 = vrot.slane %v80_v21, 1  ;;  %v87_v26 = vrot.slane %v86_v22, 1 }
  0x32   :  { %v60_v27 = vadd.f32 %v59_v23, %v58_v19  ;;  %v66_v28 = vadd.f32 %v65_v24, %v64_v20 }
  0x33   :  { %v82_v30 = vadd.f32 %v81_v25, %v80_v21  ;;  %v88_v31 = vadd.f32 %v87_v26, %v86_v22 }
  0x34   :  { %v61_v32 = vrot.slane %v60_v27, 1  ;;  %v67_v33 = vrot.slane %v66_v28, 1 }
  0x35   :  { %v91_v34 = vsel %vm71_vm0, %v88_v31, %v82_v30 }
  0x36   :  { %v62_v35 = vadd.f32 %v61_v32, %v60_v27  ;;  %v93_v36 = vadd.f32 %v91_v34, %v76_v29  ;;  %v68_v38 = vadd.f32 %v67_v33, %v66_v28 }
  0x38   :  { %94 = vst [vmem:[#allocation3] sm:$0x3] %v93_v36  ;;  %v72_v39 = vsel %vm71_vm0, %v68_v38, %v62_v35 }
  0x39   :  { %v74_v40 = vadd.f32 %v72_v39, %v56_v37 }
  0x3b   :  { %75 = vst [vmem:[#allocation2] sm:$0x3] %v74_v40 }
  0x3f   :  { %v103_v41 = vld [vmem:[#allocation3] sm:$0x3] }
  0x40   :  { %v104_v42 = vsel %vm99_vm1, %v103_v41, 0.0 }
  0x41   :  { %105 = vadd.xlane.f32.xlu0 %v104_v42 }
  0x42   :  { %v98_v43 = vld [vmem:[#allocation2] sm:$0x3] }
  0x43   :  { %v100_v44 = vsel %vm99_vm1, %v98_v43, 0.0 }
  0x45   :  { %101 = vadd.xlane.f32.xlu0 %v100_v44 }
  0xce   :  { %v106_v45 = vpop.xlane.xlu0 %105 }
  0xcf   :  { %146 = vrsqrt.f32 %v106_v45  ;;  %vm116_vm2 = vcmp.eq.f32.partialorder %v106_v45, inf  ;;  %v119_v49 = vand.u32 2147483648, %v106_v45  ;;  %vm118_vm3 = vcmp.eq.f32.partialorder %v106_v45, 0.0 }
  0xd2   :  { %v102_v46 = vpop.xlane.xlu0 %101 }
  0xd3   :  { %148 = vrsqrt.f32 %v102_v46  ;;  %vm109_vm4 = vcmp.eq.f32.partialorder %v102_v46, inf  ;;  %v112_v55 = vand.u32 2147483648, %v102_v46  ;;  %vm111_vm5 = vcmp.eq.f32.partialorder %v102_v46, 0.0 }
  0xd9   :  { %v147_v47 = vpop.eup %146 }
  0xda   :  { %v115_v48 = vmul.f32 %v147_v47, %v106_v45 }
  0xdc   :  { %v117_v50 = vsel %vm116_vm2, %v106_v45, %v115_v48 }
  0xdd   :  { %v120_v51 = vsel %vm118_vm3, %v119_v49, %v117_v50  ;;  %v149_v52 = vpop.eup %148 }
  0xde   :  { %150 = vrcp.f32 %v120_v51  ;;  %v108_v53 = vmul.f32 %v149_v52, %v102_v46 }
  0xe0   :  { %v110_v54 = vsel %vm109_vm4, %v102_v46, %v108_v53 }
  0xe1   :  { %v113_v57 = vsel %vm111_vm5, %v112_v55, %v110_v54 }
  0xe8   :  { %v151_v56 = vpop.eup %150 }
  0xe9   :  { %v122_v58 = vmul.f32 %v151_v56, %v113_v57 }
  0xeb   :  { %123 = vst [vmem:[#allocation9] sm:$0x3] %v122_v58 }
  0xec   :  { %207 = shalt.err (!%p204_p6)
}
  0xed   :  { %s208_s10 = scalar_lea.hbm %s283_s2, 32 }
  0xee   :  { %p209_p7 = scmp.ne.s32.totalorder %s283_s2, %s208_s10  ;;  %p212_p8 = scmp.lt.u32.totalorder %s208_s10, %s283_s2 }
  0xf0   :  { %p214_p9 = pnand %p212_p8, %p209_p7 }
  0xf2   :  { %217 = shalt.err (!%p214_p9)
}
  0xf3   :  { %133 = dma.vmem_to_hbm [thread:$0]  %s131_s6, 32, %s283_s2, [#allocation6]  }
  0xf4   :  { %222 = dma.done.wait [#allocation6], 32  }
  0xf5   :  { %223 = vsyncadd [#allocation6], 4294967264 }
  0xf6   :  { %137 = vsyncpa [#allocation5], 1 }
  0xf7   :  { %138 = vsyncpa [#allocation8], 1 }
  0xf8   :  { %139 = vsyncpa [#allocation6], 1 }

</bundles_post_ra>
